<compile_context>
chip_gen: v7x
topology: tpu7x:2x2x1
jax: 0.10.0
libtpu: 0.0.40
codegen_flags: <defaults>
</compile_context>

<pallas_src>
import jax
import jax.numpy as jnp
from jax.experimental import pallas as pl
from jax.experimental.pallas import tpu as pltpu

P_DROP = 0.2


def fused_kernel(x1_ref, x2_ref, keep_ref, w_ref, b_ref, o_ref):
    # v1 = x1 @ x2^T, batched over the channel dim; v2 = v1 / 1 (no-op).
    s = jnp.einsum(
        "chd,ckd->chk",
        x1_ref[...],
        x2_ref[...],
        preferred_element_type=jnp.float32,
    )
    # v3 = softmax(v2, dim=-1)
    m = jnp.max(s, axis=-1, keepdims=True)
    e = jnp.exp(s - m)
    p = e / jnp.sum(e, axis=-1, keepdims=True)
    # v4 = dropout(v3, p=0.2): keep mask precomputed outside the kernel;
    # the 1/(1-p) rescale is folded into the conv weights.
    v4 = p * keep_ref[...]                      # (C, H, K)
    # TODO(synk): v5 = v4.matmul(1) raises a TypeError in PyTorch (scalar
    # operand to matmul); interpreted here as identity.
    #
    # v6 = Conv2d(C, Cout, kernel_size=1, stride=1, padding=1):
    #   interior[o, h, k] = sum_c W[o, c] * v4[c, h, k] + b[o]
    #   border            = b[o]                    (padded input is zero)
    w = w_ref[...]                              # (Cout, C), pre-scaled by 1/(1-p)
    conv = jnp.sum(w[:, :, None, None] * v4[None, :, :, :], axis=1)  # (Cout, H, K)
    bias = b_ref[...]                           # (Cout, 1, 1)

    H = v4.shape[1]
    K = v4.shape[2]
    o_ref[...] = jnp.broadcast_to(bias, o_ref.shape)       # border = bias
    o_ref[:, 1:1 + H, 1:1 + K] = conv + bias                # interior


@jax.jit
def model_forward(x1, x2, conv_w, conv_b, dropout_key):
    B, C, H, D = x1.shape                       # (1, 8, 8, 8)
    assert B == 1
    K = x2.shape[2]                             # rows of x2 -> cols of v1
    assert x2.shape == (B, C, K, D)

    x1r = x1.reshape(C, H, D).astype(jnp.float32)
    x2r = x2.reshape(C, K, D).astype(jnp.float32)

    # Dropout keep mask (training mode), deterministic JAX PRNG.
    keep = jax.random.bernoulli(dropout_key, 1.0 - P_DROP, (C, H, K)).astype(
        jnp.float32
    )

    Cout = conv_w.shape[0]
    # Fold dropout rescale 1/(1-p) into the (linear) conv weights.
    w2d = (conv_w.reshape(Cout, C) * (1.0 / (1.0 - P_DROP))).astype(jnp.float32)
    b3 = conv_b.reshape(Cout, 1, 1).astype(jnp.float32)

    Hp, Wp = H + 2, K + 2                       # padded-1x1-conv output spatial dims

    out = pl.pallas_call(
        fused_kernel,
        out_shape=jax.ShapeDtypeStruct((Cout, Hp, Wp), jnp.float32),
        in_specs=[
            pl.BlockSpec(memory_space=pltpu.MemorySpace.VMEM),  # x1
            pl.BlockSpec(memory_space=pltpu.MemorySpace.VMEM),  # x2
            pl.BlockSpec(memory_space=pltpu.MemorySpace.VMEM),  # keep mask
            pl.BlockSpec(memory_space=pltpu.MemorySpace.VMEM),  # conv weight
            pl.BlockSpec(memory_space=pltpu.MemorySpace.VMEM),  # conv bias
        ],
        out_specs=pl.BlockSpec(memory_space=pltpu.MemorySpace.VMEM),
    )(x1r, x2r, keep, w2d, b3)

    return out.reshape(B, Cout, Hp, Wp)         # (1, 16, 10, 10)


if __name__ == "__main__":
    key = jax.random.PRNGKey(0)
    k1, k2, kw, kb, kd = jax.random.split(key, 5)

    # Inputs matching the PyTorch example shapes.
    x1 = jax.random.normal(k1, (1, 8, 8, 8), dtype=jnp.float32)
    x2 = jax.random.normal(k2, (1, 8, 8, 8), dtype=jnp.float32)

    # Deterministic Conv2d(8, 16, kernel_size=1) parameter init
    # (PyTorch-style uniform(-1/sqrt(fan_in), 1/sqrt(fan_in))).
    fan_in = 8 * 1 * 1
    bound = 1.0 / (fan_in ** 0.5)
    conv_w = jax.random.uniform(kw, (16, 8, 1, 1), jnp.float32, -bound, bound)
    conv_b = jax.random.uniform(kb, (16,), jnp.float32, -bound, bound)

    out = model_forward(x1, x2, conv_w, conv_b, kd)
    out = jax.block_until_ready(out)
    assert out.shape == (1, 16, 10, 10), out.shape
    assert out.dtype == jnp.float32
    print("KERNEL_OK")
</pallas_src>

<mosaic_0001>
module attributes {stable_mosaic.version = 11 : i64} {
  func.func @fused_kernel(%arg0: memref<8x8x8xf32, #tpu.memory_space<vmem>>, %arg1: memref<8x8x8xf32, #tpu.memory_space<vmem>>, %arg2: memref<8x8x8xf32, #tpu.memory_space<vmem>>, %arg3: memref<16x8xf32, #tpu.memory_space<vmem>>, %arg4: memref<16x1x1xf32, #tpu.memory_space<vmem>>, %arg5: memref<16x10x10xf32, #tpu.memory_space<vmem>>) attributes {dimension_semantics = [], scalar_prefetch = 0 : i64, scratch_operands = 0 : i64, tpu.core_type = #tpu.core_type<tc>} {
    %c0 = arith.constant 0 : index
    %c0_0 = arith.constant 0 : index
    %c0_1 = arith.constant 0 : index
    %0 = vector.load %arg0[%c0, %c0_0, %c0_1] : memref<8x8x8xf32, #tpu.memory_space<vmem>>, vector<8x8x8xf32>
    %c0_2 = arith.constant 0 : index
    %c0_3 = arith.constant 0 : index
    %c0_4 = arith.constant 0 : index
    %1 = vector.load %arg1[%c0_2, %c0_3, %c0_4] : memref<8x8x8xf32, #tpu.memory_space<vmem>>, vector<8x8x8xf32>
    "tpu.trace_start"() <{level = 10 : i32, message = "chd,ckd->chk"}> : () -> ()
    %cst = arith.constant dense<0.000000e+00> : vector<8x8x8xf32>
    %2 = tpu.matmul %0, %1, %cst {dimension_numbers = #tpu.dot_dimension_numbers<[2], [2], [1], [1], [0, 0, 0, 1, 1, 1], [0], [0]>} : vector<8x8x8xf32>, vector<8x8x8xf32>, vector<8x8x8xf32> -> vector<8x8x8xf32>
    "tpu.trace_stop"() : () -> ()
    %cst_5 = arith.constant dense<0xFF800000> : vector<8x8xf32>
    %3 = vector.multi_reduction <maximumf>, %2, %cst_5 [2] : vector<8x8x8xf32> to vector<8x8xf32>
    %4 = vector.shape_cast %3 : vector<8x8xf32> to vector<8x8x1xf32>
    %5 = vector.broadcast %4 : vector<8x8x1xf32> to vector<8x8x8xf32>
    %6 = arith.subf %2, %5 : vector<8x8x8xf32>
    %7 = math.exp %6 : vector<8x8x8xf32>
    %cst_6 = arith.constant dense<0.000000e+00> : vector<8x8xf32>
    %8 = vector.multi_reduction <add>, %7, %cst_6 [2] : vector<8x8x8xf32> to vector<8x8xf32>
    %9 = vector.shape_cast %8 : vector<8x8xf32> to vector<8x8x1xf32>
    %10 = vector.broadcast %9 : vector<8x8x1xf32> to vector<8x8x8xf32>
    %11 = arith.divf %7, %10 : vector<8x8x8xf32>
    %c0_7 = arith.constant 0 : index
    %c0_8 = arith.constant 0 : index
    %c0_9 = arith.constant 0 : index
    %12 = vector.load %arg2[%c0_7, %c0_8, %c0_9] : memref<8x8x8xf32, #tpu.memory_space<vmem>>, vector<8x8x8xf32>
    %13 = arith.mulf %11, %12 : vector<8x8x8xf32>
    %c0_10 = arith.constant 0 : index
    %c0_11 = arith.constant 0 : index
    %14 = vector.load %arg3[%c0_10, %c0_11] : memref<16x8xf32, #tpu.memory_space<vmem>>, vector<16x8xf32>
    %15 = vector.shape_cast %14 : vector<16x8xf32> to vector<16x8x1x1xf32>
    %16 = vector.shape_cast %13 : vector<8x8x8xf32> to vector<1x8x8x8xf32>
    %17 = vector.broadcast %15 : vector<16x8x1x1xf32> to vector<16x8x8x8xf32>
    %18 = vector.broadcast %16 : vector<1x8x8x8xf32> to vector<16x8x8x8xf32>
    %19 = arith.mulf %17, %18 : vector<16x8x8x8xf32>
    %cst_12 = arith.constant dense<0.000000e+00> : vector<16x8x8xf32>
    %20 = vector.multi_reduction <add>, %19, %cst_12 [1] : vector<16x8x8x8xf32> to vector<16x8x8xf32>
    %c0_13 = arith.constant 0 : index
    %c0_14 = arith.constant 0 : index
    %c0_15 = arith.constant 0 : index
    %21 = vector.load %arg4[%c0_13, %c0_14, %c0_15] : memref<16x1x1xf32, #tpu.memory_space<vmem>>, vector<16x1x1xf32>
    %22 = vector.shape_cast %21 : vector<16x1x1xf32> to vector<16x1x1xf32>
    %23 = vector.broadcast %22 : vector<16x1x1xf32> to vector<16x10x10xf32>
    %c0_16 = arith.constant 0 : index
    %c0_17 = arith.constant 0 : index
    %c0_18 = arith.constant 0 : index
    %24 = vector.load %arg5[%c0_16, %c0_17, %c0_18] : memref<16x10x10xf32, #tpu.memory_space<vmem>>, vector<16x10x10xf32>
    tpu.vector_store %arg5[%c0_16, %c0_17, %c0_18], %23 {strides = array<i32>} : memref<16x10x10xf32, #tpu.memory_space<vmem>>, vector<16x10x10xf32>,
    %25 = vector.broadcast %21 : vector<16x1x1xf32> to vector<16x8x8xf32>
    %26 = arith.addf %20, %25 : vector<16x8x8xf32>
    %c0_19 = arith.constant 0 : index
    %c1 = arith.constant 1 : index
    %c1_20 = arith.constant 1 : index
    %27 = vector.load %arg5[%c0_19, %c1, %c1_20] : memref<16x10x10xf32, #tpu.memory_space<vmem>>, vector<16x8x8xf32>
    tpu.vector_store %arg5[%c0_19, %c1, %c1_20], %26 {strides = array<i32>} : memref<16x10x10xf32, #tpu.memory_space<vmem>>, vector<16x8x8xf32>,
    return
  }
}

</mosaic_0001>

<bundles_post_ra>
// kernel: model_forward.1
= control target key start
LH: loop header
LB: loop body
LE: loop exit
PB: predicated region body
PF: predicated region fallthrough
CT: control target
= control target key end

     0   :  { %vm36_vm0 = vcmask 64512   ;;  %v751_v0 = vlaneseq  ;;  %v2164_v1 = vmov 0.0   ;;  %vm2165_vm1 = vmmov 0   ;;  %s3725_s1 = inlined_call_operand.vmem [shape: f32[8,8,8], index: 1, kind: input, shape index: {}]   ;;  %s3726_s0 = inlined_call_operand.vmem [shape: f32[8,8,8], index: 0, kind: input, shape index: {}]   ;;  %s3727_s3 = inlined_call_operand.vmem [shape: f32[16,8], index: 3, kind: input, shape index: {}]   ;;  %s3728_s4 = inlined_call_operand.vmem [shape: f32[16,1,1], index: 4, kind: input, shape index: {}]   ;;  %s3729_s5 = inlined_call_operand.vmem [shape: f32[16,10,10], index: 5, kind: output, shape index: {}]   ;;  %s3730_s2 = inlined_call_operand.vmem [shape: f32[8,8,8], index: 2, kind: input, shape index: {}]  }
   0x1   :  { %2086 = vmatprep.subr.mxu0 %v2164_v1  ;;  %v28_v2 = vld [vmem:[%s3725_s1] sm:$0xff]  ;;  %2088 = vmatprep.mubr.msk.f32.mxu0 %vm2165_vm1, %v2164_v1  ;;  %v29_v3 = vld [vmem:[%s3725_s1 + $0x8] sm:$0xff]  ;;  %v30_v5 = vld [vmem:[%s3725_s1 + $0x10] sm:$0xff]  ;;  %v2166_v45 = vmov 0   ;;  %vm1903_vm2 = vcmask 80896   ;;  %vm1905_vm3 = vcmask 74752  }
   0x2   :  { %2087 = vmatpush3.xpose.msk.msra.mxu0 %vm36_vm0, %v28_v2  ;;  %v20_v4 = vld [vmem:[%s3726_s0] sm:$0xff]  ;;  %2091 = vmatprep.subr.mxu1 %v2164_v1  ;;  %v752_v6 = vshrl.u32 %v751_v0, 7  ;;  %v21_v7 = vld [vmem:[%s3726_s0 + $0x8] sm:$0xff]  ;;  %v31_v8 = vld [vmem:[%s3725_s1 + $0x18] sm:$0xff]  ;;  %vm2017_vm4 = vcmask 72712  }
   0x3   :  { %2096 = vmatprep.subr.mxu0 %v2164_v1  ;;  %2092 = vmatpush3.xpose.msk.msra.mxu1 %vm36_vm0, %v29_v3  ;;  %v22_v9 = vld [vmem:[%s3726_s0 + $0x10] sm:$0xff]  ;;  %v32_v10 = vld [vmem:[%s3725_s1 + $0x20] sm:$0xff]  ;;  %v23_v12 = vld [vmem:[%s3726_s0 + $0x18] sm:$0xff] }
   0x4   :  { %2093 = vmatprep.mubr.msk.f32.mxu1 %vm2165_vm1, %v2164_v1  ;;  %2101 = vmatprep.subr.mxu1 %v2164_v1  ;;  %v2230_v11 = vsub.s32 1, %v752_v6  ;;  %v749_v13 = vld [vmem:[%s3727_s3] sm:$0xff]  ;;  %v33_v14 = vld [vmem:[%s3725_s1 + $0x28] sm:$0xff]  ;;  %v2244_v15 = vsub.s32 0, %v752_v6  ;;  %v34_v17 = vld [vmem:[%s3725_s1 + $0x30] sm:$0xff]  ;;  %v2256_v19 = vsub.s32 2, %v752_v6 }
   0x5   :  { %2089 = vmatmul.mubr.msk.f32.vlgmr.msra.gmra.mrb[0].mxu0 %vm36_vm0, %v20_v4  ;;  %v24_v16 = vld [vmem:[%s3726_s0 + $0x20] sm:$0xff]  ;;  %v25_v20 = vld [vmem:[%s3726_s0 + $0x28] sm:$0xff]  ;;  %v35_v21 = vld [vmem:[%s3725_s1 + $0x38] sm:$0xff]  ;;  %v2268_v23 = vsub.s32 4, %v752_v6  ;;  %v2277_v26 = vsub.s32 3, %v752_v6  ;;  %v2286_v29 = vsub.s32 6, %v752_v6  ;;  %2131 = vset.pattern.permute.xlu1 %v2166_v45 }
   0x6   :  { %2097 = vmatpush3.xpose.msk.msra.mxu0 %vm36_vm0, %v30_v5  ;;  %2098 = vmatprep.mubr.msk.f32.mxu0 %vm2165_vm1, %v2164_v1  ;;  %v761_v18 = vrot.slane %v749_v13, %v2230_v11  ;;  %v754_v22 = vrot.slane %v749_v13, %v2244_v15  ;;  %v26_v24 = vld [vmem:[%s3726_s0 + $0x30] sm:$0xff]  ;;  %v768_v25 = vrot.slane %v749_v13, %v2256_v19  ;;  %v27_v27 = vld [vmem:[%s3726_s0 + $0x38] sm:$0xff]  ;;  %v2290_v31 = vsub.s32 5, %v752_v6  ;;  %v750_v33 = vld [vmem:[%s3727_s3 + $0x8] sm:$0xff] }
   0x7   :  { %2094 = vmatmul.mubr.msk.f32.vlgmr.msra.gmra.mrb[0].mxu1 %vm36_vm0, %v21_v7  ;;  %2106 = vmatprep.subr.mxu0 %v2164_v1  ;;  %v782_v28 = vrot.slane %v749_v13, %v2268_v23  ;;  %v775_v30 = vrot.slane %v749_v13, %v2277_v26  ;;  %v796_v32 = vrot.slane %v749_v13, %v2286_v29  ;;  %v2297_v35 = vsub.s32 7, %v752_v6  ;;  %v2055_v5 = vld [vmem:[%s3728_s4 + $0x1] ss:$0 sm:$0xff]  ;;  %v2056_v6 = vld [vmem:[%s3728_s4 + $0x2] ss:$0 sm:$0xff] }
   0x8   :  { %2102 = vmatpush3.xpose.msk.msra.mxu1 %vm36_vm0, %v31_v8  ;;  %2103 = vmatprep.mubr.msk.f32.mxu1 %vm2165_vm1, %v2164_v1  ;;  %v789_v34 = vrot.slane %v749_v13, %v2290_v31  ;;  %v810_v36 = vrot.slane %v750_v33, %v2244_v15  ;;  %v824_v38 = vrot.slane %v750_v33, %v2256_v19  ;;  %v2054_v7 = vld [vmem:[%s3728_s4] ss:$0 sm:$0xff]  ;;  %v2057_v8 = vld [vmem:[%s3728_s4 + $0x3] ss:$0 sm:$0xff] }
   0x9   :  { %2099 = vmatmul.mubr.msk.f32.vlgmr.msra.gmra.mrb[2].mxu0 %vm36_vm0, %v22_v9  ;;  %2111 = vmatprep.subr.mxu1 %v2164_v1  ;;  %v803_v37 = vrot.slane %v749_v13, %v2297_v35  ;;  %v817_v39 = vrot.slane %v750_v33, %v2230_v11  ;;  %v838_v40 = vrot.slane %v750_v33, %v2268_v23  ;;  %v2059_v9 = vld [vmem:[%s3728_s4 + $0x5] ss:$0 sm:$0xff]  ;;  %v2065_v13 = vld [vmem:[%s3728_s4 + $0xb] ss:$0 sm:$0xff] }
   0xa   :  { %2107 = vmatpush3.xpose.msk.msra.mxu0 %vm36_vm0, %v32_v10  ;;  %2108 = vmatprep.mubr.msk.f32.mxu0 %vm2165_vm1, %v2164_v1  ;;  %v831_v41 = vrot.slane %v750_v33, %v2277_v26  ;;  %v852_v42 = vrot.slane %v750_v33, %v2286_v29  ;;  %v845_v43 = vrot.slane %v750_v33, %v2290_v31  ;;  %v2061_v10 = vld [vmem:[%s3728_s4 + $0x7] ss:$0 sm:$0xff] }
   0xb   :  { %2104 = vmatmul.mubr.msk.f32.vlgmr.msra.gmra.mrb[2].mxu1 %vm36_vm0, %v23_v12  ;;  %2116 = vmatprep.subr.mxu0 %v2164_v1  ;;  %v859_v44 = vrot.slane %v750_v33, %v2297_v35  ;;  %v2063_v12 = vld [vmem:[%s3728_s4 + $0x9] ss:$0 sm:$0xff] }
   0xc   :  { %2112 = vmatpush3.xpose.msk.msra.mxu1 %vm36_vm0, %v33_v14  ;;  %2113 = vmatprep.mubr.msk.f32.mxu1 %vm2165_vm1, %v2164_v1  ;;  %v2067_v14 = vld [vmem:[%s3728_s4 + $0xd] ss:$0 sm:$0xff] }
   0xd   :  { %2109 = vmatmul.mubr.msk.f32.vlgmr.msra.gmra.mrb[4].mxu0 %vm36_vm0, %v24_v16  ;;  %2121 = vmatprep.subr.mxu1 %v2164_v1 }
   0xe   :  { %2117 = vmatpush3.xpose.msk.msra.mxu0 %vm36_vm0, %v34_v17  ;;  %2118 = vmatprep.mubr.msk.f32.mxu0 %vm2165_vm1, %v2164_v1  ;;  %v2058_v17 = vld [vmem:[%s3728_s4 + $0x4] ss:$0 sm:$0xff] }
   0xf   :  { %2114 = vmatmul.mubr.msk.f32.vlgmr.msra.gmra.mrb[4].mxu1 %vm36_vm0, %v25_v20  ;;  %763 = vbcast.lane.b32.xlu1 %v761_v18, 256  ;;  %v2060_v18 = vld [vmem:[%s3728_s4 + $0x6] ss:$0 sm:$0xff]  ;;  %v2062_v20 = vld [vmem:[%s3728_s4 + $0x8] ss:$0 sm:$0xff] }
  0x10   :  { %2122 = vmatpush3.xpose.msk.msra.mxu1 %vm36_vm0, %v35_v21  ;;  %2123 = vmatprep.mubr.msk.f32.mxu1 %vm2165_vm1, %v2164_v1 }
  0x11   :  { %2119 = vmatmul.mubr.msk.f32.vlgmr.msra.gmra.mrb[6].mxu0 %vm36_vm0, %v26_v24  ;;  %756 = vbcast.lane.b32.xlu0 %v754_v22, 256  ;;  %v2064_v22 = vld [vmem:[%s3728_s4 + $0xa] ss:$0 sm:$0xff] }
  0x12   :  { %2130 = vset.pattern.permute.xlu0 %v2166_v45 }
  0x13   :  { %2124 = vmatmul.mubr.msk.f32.vlgmr.msra.gmra.mrb[6].mxu1 %vm36_vm0, %v27_v27  ;;  %770 = vbcast.lane.b32.xlu1 %v768_v25, 256  ;;  %v2066_v25 = vld [vmem:[%s3728_s4 + $0xc] ss:$0 sm:$0xff] }
  0x15   :  { %784 = vbcast.lane.b32.xlu0 %v782_v28, 256 }
  0x17   :  { %777 = vbcast.lane.b32.xlu1 %v775_v30, 256 }
  0x19   :  { %798 = vbcast.lane.b32.xlu0 %v796_v32, 256 }
  0x1b   :  { %791 = vbcast.lane.b32.xlu1 %v789_v34, 256 }
  0x1d   :  { %812 = vbcast.lane.b32.xlu0 %v810_v36, 256 }
  0x1f   :  { %805 = vbcast.lane.b32.xlu1 %v803_v37, 256 }
  0x21   :  { %826 = vbcast.lane.b32.xlu0 %v824_v38, 256 }
  0x23   :  { %819 = vbcast.lane.b32.xlu1 %v817_v39, 256 }
  0x25   :  { %840 = vbcast.lane.b32.xlu0 %v838_v40, 256 }
  0x27   :  { %833 = vbcast.lane.b32.xlu1 %v831_v41, 256 }
  0x29   :  { %854 = vbcast.lane.b32.xlu0 %v852_v42, 256 }
  0x2b   :  { %847 = vbcast.lane.b32.xlu1 %v845_v43, 256 }
  0x2f   :  { %861 = vbcast.lane.b32.xlu1 %v859_v44, 256 }
  0x81   :  { %v2376_v21 = vpop.permute.xlu1 %763 }
  0x83   :  { %v2386_v27 = vpop.permute.xlu0 %756 }
  0x85   :  { %v2381_v24 = vpop.permute.xlu1 %770 }
  0x87   :  { %v2390_v30 = vpop.permute.xlu0 %784 }
  0x89   :  { %v2388_v28 = vpop.permute.xlu1 %777 }
  0x8b   :  { %v2394_v33 = vpop.permute.xlu0 %798 }
  0x8d   :  { %v2392_v32 = vpop.permute.xlu1 %791 }
  0x8f   :  { %v2398_v36 = vpop.permute.xlu0 %812 }
  0x91   :  { %v2396_v34 = vpop.permute.xlu1 %805 }
  0x93   :  { %v2402_v38 = vpop.permute.xlu0 %826 }
  0x95   :  { %v2400_v37 = vpop.permute.xlu1 %819 }
  0x97   :  { %v2406_v40 = vpop.permute.xlu0 %840 }
  0x98   :  { %3748 = vst [vmem:[#allocation2_spill] sm:$0xff] %v2406_v40 }
  0x99   :  { %v2404_v39 = vpop.permute.xlu1 %833 }
  0x9b   :  { %v2410_v42 = vpop.permute.xlu0 %854 }
  0x9c   :  { %3749 = vst [vmem:[#allocation3_spill] sm:$0xff] %v2410_v42 }
  0x9d   :  { %v2408_v41 = vpop.permute.xlu1 %847 }
  0xa1   :  { %v2412_v43 = vpop.permute.xlu1 %861 }
  0xa2   :  { %3750 = vst [vmem:[#allocation4_spill] sm:$0xff] %v2412_v43 }
  0xd8   :  { %v2308_v46 = vpop.f32.mrb[0].mxu0 }
  0xd9   :  { %v2090_v47 = vpop.f32.mrb[1].mxu0  ;;  %v645_v48 = vsel %vm36_vm0, %v2308_v46, -inf }
  0xda   :  { %646 = vmax.xlane.f32.xlu0 %v645_v48  ;;  %v2312_v49 = vpop.f32.mrb[0].mxu1 }
  0xdb   :  { %v2095_v50 = vpop.f32.mrb[1].mxu1  ;;  %v648_v51 = vsel %vm36_vm0, %v2312_v49, -inf }
  0xdc   :  { %v2316_v52 = vpop.f32.mrb[2].mxu0 }
  0xdd   :  { %v2100_v53 = vpop.f32.mrb[3].mxu0  ;;  %v651_v54 = vsel %vm36_vm0, %v2316_v52, -inf }
  0xde   :  { %649 = vmax.xlane.f32.xlu0 %v648_v51  ;;  %652 = vmax.xlane.f32.xlu1 %v651_v54  ;;  %v2320_v55 = vpop.f32.mrb[2].mxu1 }
  0xdf   :  { %v2105_v56 = vpop.f32.mrb[3].mxu1  ;;  %v654_v57 = vsel %vm36_vm0, %v2320_v55, -inf }
  0xe0   :  { %v2324_v58 = vpop.f32.mrb[4].mxu0 }
  0xe1   :  { %v657_v59 = vsel %vm36_vm0, %v2324_v58, -inf  ;;  %v2110_v60 = vpop.f32.mrb[5].mxu0 }
  0xe2   :  { %655 = vmax.xlane.f32.xlu1 %v654_v57  ;;  %658 = vmax.xlane.f32.xlu0 %v657_v59  ;;  %v2328_v61 = vpop.f32.mrb[4].mxu1 }
  0xe3   :  { %v2115_v62 = vpop.f32.mrb[5].mxu1  ;;  %v660_v63 = vsel %vm36_vm0, %v2328_v61, -inf }
  0xe4   :  { %v2332_v0 = vpop.f32.mrb[6].mxu0 }
  0xe5   :  { %v663_v1 = vsel %vm36_vm0, %v2332_v0, -inf  ;;  %v2120_v2 = vpop.f32.mrb[7].mxu0 }
  0xe6   :  { %661 = vmax.xlane.f32.xlu1 %v660_v63  ;;  %664 = vmax.xlane.f32.xlu0 %v663_v1  ;;  %v2336_v3 = vpop.f32.mrb[6].mxu1 }
  0xe7   :  { %v2125_v4 = vpop.f32.mrb[7].mxu1  ;;  %v666_v16 = vsel %vm36_vm0, %v2336_v3, -inf }
  0xf7   :  { %1844 = vperm.xlu1 %2131, %v2055_v5  }
  0xfb   :  { %1848 = vperm.xlu1 %2131, %v2056_v6  }
  0xfc   :  { %1840 = vperm.xlu0 %2130, %v2054_v7  }
 0x100   :  { %1852 = vperm.xlu0 %2130, %v2057_v8  }
 0x104   :  { %1860 = vperm.xlu0 %2130, %v2059_v9  }
 0x108   :  { %1868 = vperm.xlu0 %2130, %v2061_v10  }
 0x10c   :  { %1876 = vperm.xlu0 %2130, %v2063_v12  }
 0x110   :  { %1884 = vperm.xlu0 %2130, %v2065_v13  }
 0x114   :  { %1892 = vperm.xlu0 %2130, %v2067_v14  }
 0x11f   :  { %667 = vmax.xlane.f32.xlu1 %v666_v16 }
 0x130   :  { %1856 = vperm.xlu1 %2131, %v2058_v17  }
 0x134   :  { %1864 = vperm.xlu1 %2131, %v2060_v18  }
 0x138   :  { %1872 = vperm.xlu1 %2131, %v2062_v20  }
 0x13c   :  { %1880 = vperm.xlu1 %2131, %v2064_v22  }
 0x140   :  { %1888 = vperm.xlu1 %2131, %v2066_v25  }
 0x167   :  { %v647_v44 = vpop.xlane.xlu0 %646 }
 0x168   :  { %v669_v45 = vsub.f32 %v2308_v46, %v647_v44 }
 0x16a   :  { %v677_v47 = vmul.f32 1.442695, %v669_v45 }
 0x16b   :  { %v650_v48 = vpop.xlane.xlu0 %649  ;;  %v653_v50 = vpop.xlane.xlu1 %652 }
 0x16c   :  { %2132 = vpow2.f32 %v677_v47  ;;  %v670_v51 = vsub.f32 %v2312_v49, %v650_v48  ;;  %v671_v53 = vsub.f32 %v2316_v52, %v653_v50 }
 0x16e   :  { %v679_v54 = vmul.f32 1.442695, %v670_v51  ;;  %v681_v56 = vmul.f32 1.442695, %v671_v53  ;;  %v2069_v51 = vld [vmem:[%s3728_s4 + $0xf] ss:$0 sm:$0xff] }
 0x16f   :  { %v656_v57 = vpop.xlane.xlu1 %655  ;;  %v659_v59 = vpop.xlane.xlu0 %658 }
 0x170   :  { %2134 = vpow2.f32 %v679_v54  ;;  %v672_v60 = vsub.f32 %v2320_v55, %v656_v57  ;;  %v673_v62 = vsub.f32 %v2324_v58, %v659_v59 }
 0x171   :  { %2136 = vpow2.f32 %v681_v56 }
 0x172   :  { %v683_v63 = vmul.f32 1.442695, %v672_v60  ;;  %v685_v46 = vmul.f32 1.442695, %v673_v62 }
 0x173   :  { %v662_v1 = vpop.xlane.xlu1 %661  ;;  %v665_v2 = vpop.xlane.xlu0 %664 }
 0x174   :  { %2138 = vpow2.f32 %v683_v63  ;;  %v674_v4 = vsub.f32 %v2328_v61, %v662_v1  ;;  %v675_v49 = vsub.f32 %v2332_v0, %v665_v2  ;;  %v2068_v1 = vld [vmem:[%s3728_s4 + $0xe] ss:$0 sm:$0xff]  ;;  %v898_v2 = vrot.slane %v2376_v21, %v2244_v15 }
 0x175   :  { %2140 = vpow2.f32 %v685_v46 }
 0x176   :  { %v2421_v52 = vpop.eup %2132  ;;  %v687_v5 = vmul.f32 1.442695, %v674_v4  ;;  %v689_v6 = vmul.f32 1.442695, %v675_v49  ;;  %v902_v4 = vrot.slane %v2376_v21, %v2230_v11  ;;  %v906_v49 = vrot.slane %v2376_v21, %v2256_v19 }
 0x177   :  { %v2423_v55 = vpop.permute.xlu1 %1844  ;;  %v693_v58 = vsel %vm36_vm0, %v2421_v52, 0.0 }
 0x178   :  { %2142 = vpow2.f32 %v687_v5  ;;  %1907 = vst.msk [vmem:[%s3729_s5 + $0x10] sm:$0xff] %vm1903_vm2, %v2423_v55  ;;  %694 = vadd.xlane.f32.xlu0 %v693_v58  ;;  %v1314_v58 = vrot.slane %v2410_v42, %v2244_v15 }
 0x179   :  { %1908 = vst.msk [vmem:[%s3729_s5 + $0x18] sm:$0x3] %vm1905_vm3, %v2423_v55  ;;  %2144 = vpow2.f32 %v689_v6 }
 0x17a   :  { %v2437_v61 = vpop.eup %2134 }
 0x17b   :  { %v2439_v0 = vpop.eup %2136  ;;  %v2441_v7 = vpop.permute.xlu1 %1848  ;;  %v696_v8 = vsel %vm36_vm0, %v2437_v61, 0.0 }
 0x17c   :  { %v2445_v9 = vpop.permute.xlu0 %1840  ;;  %1909 = vst.msk [vmem:[%s3729_s5 + $0x20] sm:$0xff] %vm1903_vm2, %v2441_v7  ;;  %697 = vadd.xlane.f32.xlu1 %v696_v8  ;;  %v699_v10 = vsel %vm36_vm0, %v2439_v0, 0.0  ;;  %v737_v8 = vld [vmem:[%s3730_s2 + $0x20] sm:$0xff] }
 0x17d   :  { %1910 = vst.msk [vmem:[%s3729_s5 + $0x28] sm:$0x3] %vm1905_vm3, %v2441_v7  ;;  %1906 = vst.msk [vmem:[%s3729_s5 + $0x8] sm:$0x3] %vm1905_vm3, %v2445_v9  ;;  %700 = vadd.xlane.f32.xlu0 %v699_v10  ;;  %v1318_v10 = vrot.slane %v2410_v42, %v2230_v11 }
 0x17e   :  { %1904 = vst.msk [vmem:[%s3729_s5] sm:$0xff] %vm1903_vm2, %v2445_v9  ;;  %v2469_v12 = vpop.eup %2138 }
 0x17f   :  { %v2471_v13 = vpop.eup %2140  ;;  %v702_v14 = vsel %vm36_vm0, %v2469_v12, 0.0 }
 0x180   :  { %v2475_v16 = vpop.permute.xlu0 %1852  ;;  %703 = vadd.xlane.f32.xlu1 %v702_v14  ;;  %v705_v17 = vsel %vm36_vm0, %v2471_v13, 0.0 }
 0x181   :  { %1911 = vst.msk [vmem:[%s3729_s5 + $0x30] sm:$0xff] %vm1903_vm2, %v2475_v16  ;;  %706 = vadd.xlane.f32.xlu0 %v705_v17 }
 0x182   :  { %1912 = vst.msk [vmem:[%s3729_s5 + $0x38] sm:$0x3] %vm1905_vm3, %v2475_v16  ;;  %v2489_v18 = vpop.eup %2142 }
 0x183   :  { %v2491_v20 = vpop.eup %2144  ;;  %v708_v22 = vsel %vm36_vm0, %v2489_v18, 0.0 }
 0x184   :  { %v2495_v25 = vpop.permute.xlu0 %1860  ;;  %709 = vadd.xlane.f32.xlu1 %v708_v22  ;;  %v711_v44 = vsel %vm36_vm0, %v2491_v20, 0.0 }
 0x185   :  { %3751 = vst [vmem:[#allocation5_spill] sm:$0xff] %v2495_v25  ;;  %1915 = vst.msk [vmem:[%s3729_s5 + $0x50] sm:$0xff] %vm1903_vm2, %v2495_v25  ;;  %712 = vadd.xlane.f32.xlu0 %v711_v44  ;;  %v734_v44 = vld [vmem:[%s3730_s2 + $0x8] sm:$0xff] }
 0x186   :  { %1916 = vst.msk [vmem:[%s3729_s5 + $0x58] sm:$0x3] %vm1905_vm3, %v2495_v25 }
 0x188   :  { %v2509_v45 = vpop.permute.xlu0 %1868 }
 0x189   :  { %3752 = vst [vmem:[#allocation6_spill] sm:$0xff] %v2509_v45  ;;  %1919 = vst.msk [vmem:[%s3729_s5 + $0x70] sm:$0xff] %vm1903_vm2, %v2509_v45 }
 0x18a   :  { %1920 = vst.msk [vmem:[%s3729_s5 + $0x78] sm:$0x3] %vm1905_vm3, %v2509_v45 }
 0x18c   :  { %v2521_v47 = vpop.permute.xlu0 %1876 }
 0x18d   :  { %3753 = vst [vmem:[#allocation7_spill] sm:$0xff] %v2521_v47  ;;  %1923 = vst.msk [vmem:[%s3729_s5 + $0x90] sm:$0xff] %vm1903_vm2, %v2521_v47 }
 0x18e   :  { %1924 = vst.msk [vmem:[%s3729_s5 + $0x98] sm:$0x3] %vm1905_vm3, %v2521_v47 }
 0x190   :  { %v2533_v48 = vpop.permute.xlu0 %1884 }
 0x191   :  { %3754 = vst [vmem:[#allocation8_spill] sm:$0xff] %v2533_v48  ;;  %1927 = vst.msk [vmem:[%s3729_s5 + $0xb0] sm:$0xff] %vm1903_vm2, %v2533_v48 }
 0x192   :  { %1928 = vst.msk [vmem:[%s3729_s5 + $0xb8] sm:$0x3] %vm1905_vm3, %v2533_v48 }
 0x194   :  { %v2545_v50 = vpop.permute.xlu0 %1892 }
 0x195   :  { %3755 = vst [vmem:[#allocation9_spill] sm:$0xff] %v2545_v50  ;;  %1931 = vst.msk [vmem:[%s3729_s5 + $0xd0] sm:$0xff] %vm1903_vm2, %v2545_v50 }
 0x196   :  { %1932 = vst.msk [vmem:[%s3729_s5 + $0xd8] sm:$0x3] %vm1905_vm3, %v2545_v50 }
 0x19b   :  { %1900 = vperm.xlu0 %2130, %v2069_v51  }
 0x1ac   :  { %v668_v53 = vpop.xlane.xlu1 %667 }
 0x1ad   :  { %v676_v54 = vsub.f32 %v2336_v3, %v668_v53 }
 0x1af   :  { %v691_v56 = vmul.f32 1.442695, %v676_v54 }
 0x1b0   :  { %v2561_v57 = vpop.permute.xlu1 %1856 }
 0x1b1   :  { %3756 = vst [vmem:[#allocation10_spill] sm:$0xff] %v2561_v57  ;;  %2146 = vpow2.f32 %v691_v56  ;;  %1913 = vst.msk [vmem:[%s3729_s5 + $0x40] sm:$0xff] %vm1903_vm2, %v2561_v57 }
 0x1b2   :  { %1914 = vst.msk [vmem:[%s3729_s5 + $0x48] sm:$0x3] %vm1905_vm3, %v2561_v57 }
 0x1b4   :  { %v2573_v59 = vpop.permute.xlu1 %1864 }
 0x1b5   :  { %3757 = vst [vmem:[#allocation11_spill] sm:$0xff] %v2573_v59  ;;  %1917 = vst.msk [vmem:[%s3729_s5 + $0x60] sm:$0xff] %vm1903_vm2, %v2573_v59 }
 0x1b6   :  { %1918 = vst.msk [vmem:[%s3729_s5 + $0x68] sm:$0x3] %vm1905_vm3, %v2573_v59 }
 0x1b8   :  { %v2585_v3 = vpop.permute.xlu1 %1872 }
 0x1b9   :  { %3758 = vst [vmem:[#allocation12_spill] sm:$0xff] %v2585_v3  ;;  %1921 = vst.msk [vmem:[%s3729_s5 + $0x80] sm:$0xff] %vm1903_vm2, %v2585_v3 }
 0x1ba   :  { %1922 = vst.msk [vmem:[%s3729_s5 + $0x88] sm:$0x3] %vm1905_vm3, %v2585_v3 }
 0x1bb   :  { %v2597_v60 = vpop.eup %2146 }
 0x1bc   :  { %v2599_v62 = vpop.permute.xlu1 %1880  ;;  %v714_v63 = vsel %vm36_vm0, %v2597_v60, 0.0 }
 0x1bd   :  { %3759 = vst [vmem:[#allocation13_spill] sm:$0xff] %v2599_v62  ;;  %1925 = vst.msk [vmem:[%s3729_s5 + $0xa0] sm:$0xff] %vm1903_vm2, %v2599_v62  ;;  %715 = vadd.xlane.f32.xlu1 %v714_v63 }
 0x1be   :  { %1926 = vst.msk [vmem:[%s3729_s5 + $0xa8] sm:$0x3] %vm1905_vm3, %v2599_v62  ;;  %v3773_v62 = vrot.slane %v2376_v21, %v2290_v31 }
 0x1c0   :  { %v2613_v46 = vpop.permute.xlu1 %1888 }
 0x1c1   :  { %3760 = vst [vmem:[#allocation14_spill] sm:$0xff] %v2613_v46  ;;  %1929 = vst.msk [vmem:[%s3729_s5 + $0xc0] sm:$0xff] %vm1903_vm2, %v2613_v46 }
 0x1c2   :  { %1930 = vst.msk [vmem:[%s3729_s5 + $0xc8] sm:$0x3] %vm1905_vm3, %v2613_v46 }
 0x1ce   :  { %1896 = vperm.xlu1 %2131, %v2068_v1   ;;  %v735_v1 = vld [vmem:[%s3730_s2 + $0x10] sm:$0xff] }
 0x205   :  { %v695_v56 = vpop.xlane.xlu0 %694 }
 0x206   :  { %2148 = vrcp.f32 %v695_v56 }
 0x209   :  { %v698_v54 = vpop.xlane.xlu1 %697 }
 0x20a   :  { %2150 = vrcp.f32 %v698_v54  ;;  %v701_v63 = vpop.xlane.xlu0 %700  ;;  %v733_v54 = vld [vmem:[%s3730_s2] sm:$0xff] }
 0x20b   :  { %2152 = vrcp.f32 %v701_v63  ;;  %v1322_v63 = vrot.slane %v2410_v42, %v2256_v19 }
 0x20d   :  { %v704_v22 = vpop.xlane.xlu1 %703 }
 0x20e   :  { %2154 = vrcp.f32 %v704_v22  ;;  %v707_v6 = vpop.xlane.xlu0 %706 }
 0x20f   :  { %2156 = vrcp.f32 %v707_v6 }
 0x210   :  { %v2149_v53 = vpop.eup %2148 }
 0x211   :  { %v718_v17 = vmul.f32 %v2149_v53, %v2421_v52  ;;  %v710_v22 = vpop.xlane.xlu1 %709 }
 0x212   :  { %2158 = vrcp.f32 %v710_v22  ;;  %v713_v6 = vpop.xlane.xlu0 %712 }
 0x213   :  { %v2842_v53 = vmul.f32 %v733_v54, %v718_v17  ;;  %2160 = vrcp.f32 %v713_v6 }
 0x214   :  { %v2151_v22 = vpop.eup %2150 }
 0x215   :  { %v2153_v6 = vpop.eup %2152  ;;  %v720_v14 = vmul.f32 %v2151_v22, %v2437_v61  ;;  %v1487_v54 = vmul.f32 %v1314_v58, %v2842_v53  ;;  %v1383_v61 = vmul.f32 %v898_v2, %v2842_v53  ;;  %v736_v2 = vld [vmem:[%s3730_s2 + $0x18] sm:$0xff] }
 0x216   :  { %v722_v17 = vmul.f32 %v2153_v6, %v2439_v0 }
 0x217   :  { %v2877_v51 = vmul.f32 %v734_v44, %v720_v14 }
 0x218   :  { %v2155_v58 = vpop.eup %2154  ;;  %v2885_v6 = vmul.f32 %v735_v1, %v722_v17 }
 0x219   :  { %v2157_v52 = vpop.eup %2156  ;;  %v724_v22 = vmul.f32 %v2155_v58, %v2469_v12  ;;  %v1488_v1 = vmul.f32 %v1318_v10, %v2877_v51  ;;  %v1384_v17 = vmul.f32 %v902_v4, %v2877_v51  ;;  %v1713_v58 = vsel %vm36_vm0, %v1487_v54, 0.0 }
 0x21a   :  { %v726_v44 = vmul.f32 %v2157_v52, %v2471_v13  ;;  %v2911_v12 = vpop.permute.xlu0 %1900  ;;  %v1385_v10 = vmul.f32 %v906_v49, %v2885_v6  ;;  %v1518_v4 = vsel %vm36_vm0, %v1383_v61, 0.0  ;;  %v1489_v49 = vmul.f32 %v1322_v63, %v2885_v6  ;;  %v738_v61 = vld [vmem:[%s3730_s2 + $0x28] sm:$0xff] }
 0x21b   :  { %3761 = vst [vmem:[#allocation15_spill] sm:$0xff] %v2911_v12  ;;  %v2919_v0 = vmul.f32 %v736_v2, %v724_v22  ;;  %1935 = vst.msk [vmem:[%s3729_s5 + $0xf0] sm:$0xff] %vm1903_vm2, %v2911_v12  ;;  %v1714_v13 = vsel %vm36_vm0, %v1488_v1, 0.0  ;;  %v1519_v52 = vsel %vm36_vm0, %v1384_v17, 0.0  ;;  %v3762_v17 = vrot.slane %v2410_v42, %v2277_v26 }
 0x21c   :  { %1936 = vst.msk [vmem:[%s3729_s5 + $0xf8] sm:$0x3] %vm1905_vm3, %v2911_v12  ;;  %v2159_v54 = vpop.eup %2158  ;;  %v1715_v22 = vadd.f32 %v1714_v13, %v1713_v58  ;;  %v1520_v2 = vadd.f32 %v1519_v52, %v1518_v4  ;;  %v2944_v56 = vmul.f32 %v737_v8, %v726_v44  ;;  %v3763_v58 = vrot.slane %v2376_v21, %v2277_v26 }
 0x21d   :  { %v2161_v5 = vpop.eup %2160  ;;  %v728_v63 = vmul.f32 %v2159_v54, %v2489_v18  ;;  %v1490_v12 = vmul.f32 %v3762_v17, %v2919_v0  ;;  %v1521_v52 = vsel %vm36_vm0, %v1385_v10, 0.0  ;;  %v3764_v8 = vrot.slane %v2386_v27, %v2244_v15 }
 0x21e   :  { %v1386_v4 = vmul.f32 %v3763_v58, %v2919_v0  ;;  %v730_v13 = vmul.f32 %v2161_v5, %v2491_v20  ;;  %v3765_v18 = vrot.slane %v2386_v27, %v2230_v11  ;;  %v739_v58 = vld [vmem:[%s3730_s2 + $0x30] sm:$0xff]  ;;  %v1716_v20 = vsel %vm36_vm0, %v1489_v49, 0.0 }
 0x21f   :  { %v1375_v44 = vmul.f32 %v3764_v8, %v2842_v53  ;;  %v2965_v17 = vmul.f32 %v738_v61, %v728_v63  ;;  %v1522_v5 = vadd.f32 %v1521_v52, %v1520_v2  ;;  %v1717_v1 = vadd.f32 %v1716_v20, %v1715_v22 }
 0x220   :  { %v1376_v54 = vmul.f32 %v3765_v18, %v2877_v51  ;;  %v1523_v10 = vsel %vm36_vm0, %v1386_v4, 0.0  ;;  %v3766_v8 = vrot.slane %v2388_v28, %v2244_v15  ;;  %v3767_v61 = vrot.slane %v2381_v24, %v2244_v15 }
 0x221   :  { %v3768_v18 = vrot.slane %v2392_v32, %v2244_v15  ;;  %v1718_v49 = vsel %vm36_vm0, %v1490_v12, 0.0  ;;  %v3769_v22 = vrot.slane %v2410_v42, %v2268_v23  ;;  %v3770_v4 = vrot.slane %v2376_v21, %v2268_v23 }
 0x222   :  { %v1399_v14 = vmul.f32 %v3766_v8, %v2842_v53  ;;  %v1391_v63 = vmul.f32 %v3767_v61, %v2842_v53  ;;  %v3771_v20 = vrot.slane %v2386_v27, %v2256_v19  ;;  %v2997_v61 = vmul.f32 %v739_v58, %v730_v13 }
 0x223   :  { %v1415_v46 = vmul.f32 %v3768_v18, %v2842_v53  ;;  %v1491_v2 = vmul.f32 %v3769_v22, %v2944_v56  ;;  %v1387_v52 = vmul.f32 %v3770_v4, %v2944_v56  ;;  %v1524_v18 = vadd.f32 %v1523_v10, %v1522_v5 }
 0x224   :  { %v1377_v8 = vmul.f32 %v3771_v20, %v2885_v6  ;;  %v3772_v12 = vrot.slane %v2386_v27, %v2277_v26  ;;  %v1504_v22 = vsel %vm36_vm0, %v1376_v54, 0.0  ;;  %v1388_v4 = vmul.f32 %v3773_v62, %v2965_v17 }
 0x225   :  { %v1503_v43 = vsel %vm36_vm0, %v1375_v44, 0.0  ;;  %v1719_v58 = vadd.f32 %v1718_v49, %v1717_v1  ;;  %v1548_v5 = vsel %vm36_vm0, %v1399_v14, 0.0  ;;  %v1533_v10 = vsel %vm36_vm0, %v1391_v63, 0.0 }
 0x226   :  { %v1378_v50 = vmul.f32 %v3772_v12, %v2919_v0  ;;  %v1578_v54 = vsel %vm36_vm0, %v1415_v46, 0.0  ;;  %v3774_v12 = vrot.slane %v2410_v42, %v2290_v31  ;;  %v1720_v44 = vsel %vm36_vm0, %v1491_v2, 0.0 }
 0x227   :  { %v1525_v48 = vsel %vm36_vm0, %v1387_v52, 0.0  ;;  %v1505_v20 = vadd.f32 %v1504_v22, %v1503_v43  ;;  %v3775_v1 = vrot.slane %v2376_v21, %v2286_v29  ;;  %v1506_v63 = vsel %vm36_vm0, %v1377_v8, 0.0 }
 0x228   :  { %v1492_v62 = vmul.f32 %v3774_v12, %v2965_v17  ;;  %v1526_v14 = vadd.f32 %v1525_v48, %v1524_v18  ;;  %v1508_v46 = vsel %vm36_vm0, %v1378_v50, 0.0  ;;  %v1527_v13 = vsel %vm36_vm0, %v1388_v4, 0.0 }
 0x229   :  { %v1389_v49 = vmul.f32 %v3775_v1, %v2997_v61  ;;  %v1507_v3 = vadd.f32 %v1506_v63, %v1505_v20  ;;  %v3776_v2 = vrot.slane %v2388_v28, %v2230_v11  ;;  %v3777_v43 = vrot.slane %v2388_v28, %v2256_v19 }
 0x22a   :  { %v3778_v48 = vrot.slane %v2410_v42, %v2286_v29  ;;  %v3780_v50 = vrot.slane %v2386_v27, %v2268_v23  ;;  %v3781_v22 = vrot.slane %v2386_v27, %v2290_v31  ;;  %v3782_v20 = vrot.slane %v2386_v27, %v2286_v29 }
 0x22b   :  { %v1400_v12 = vmul.f32 %v3776_v2, %v2877_v51  ;;  %v1401_v52 = vmul.f32 %v3777_v43, %v2885_v6  ;;  %v1509_v63 = vadd.f32 %v1508_v46, %v1507_v3  ;;  %v3783_v2 = vrot.slane %v2388_v28, %v2277_v26 }
 0x22c   :  { %v3041_v8 = vmul.f32 %v3778_v48, %v2997_v61  ;;  %v1379_v18 = vmul.f32 %v3780_v50, %v2944_v56  ;;  %v1380_v4 = vmul.f32 %v3781_v22, %v2965_v17  ;;  %v1381_v1 = vmul.f32 %v3782_v20, %v2997_v61 }
 0x22d   :  { %v1402_v43 = vmul.f32 %v3783_v2, %v2919_v0  ;;  %v1549_v48 = vsel %vm36_vm0, %v1400_v12, 0.0  ;;  %v3784_v50 = vrot.slane %v2381_v24, %v2230_v11  ;;  %v3065_v22 = vsel %vm36_vm0, %v1492_v62, 0.0 }
 0x22e   :  { %3779 = vst [vmem:[#allocation16_spill] sm:$0xff] %v3041_v8  ;;  %3785 = vst [vmem:[#allocation17_spill] sm:$0xff] %v3065_v22  ;;  %v3067_v42 = vadd.f32 %v1720_v44, %v1719_v58  ;;  %v1528_v40 = vadd.f32 %v1527_v13, %v1526_v14  ;;  %v1550_v20 = vadd.f32 %v1549_v48, %v1548_v5  ;;  %v1529_v3 = vsel %vm36_vm0, %v1389_v49, 0.0 }
 0x22f   :  { %v1392_v8 = vmul.f32 %v3784_v50, %v2877_v51  ;;  %v3787_v46 = vrot.slane %v2388_v28, %v2268_v23  ;;  %v1551_v12 = vsel %vm36_vm0, %v1401_v52, 0.0  ;;  %v3788_v50 = vrot.slane %v2381_v24, %v2256_v19 }
 0x230   :  { %3786 = vst [vmem:[#allocation18_spill] sm:$0xff] %v3067_v42  ;;  %v1510_v62 = vsel %vm36_vm0, %v1379_v18, 0.0  ;;  %v1512_v58 = vsel %vm36_vm0, %v1380_v4, 0.0  ;;  %v1552_v13 = vadd.f32 %v1551_v12, %v1550_v20  ;;  %v3789_v5 = vrot.slane %v2381_v24, %v2277_v26 }
 0x231   :  { %v1403_v2 = vmul.f32 %v3787_v46, %v2944_v56  ;;  %v1393_v47 = vmul.f32 %v3788_v50, %v2885_v6  ;;  %v1511_v49 = vadd.f32 %v1510_v62, %v1509_v63  ;;  %v1514_v14 = vsel %vm36_vm0, %v1381_v1, 0.0 }
 0x232   :  { %v1394_v44 = vmul.f32 %v3789_v5, %v2919_v0  ;;  %v1553_v52 = vsel %vm36_vm0, %v1402_v43, 0.0  ;;  %v1534_v48 = vsel %vm36_vm0, %v1392_v8, 0.0  ;;  %v3088_v46 = vadd.f32 %v1529_v3, %v1528_v40 }
 0x233   :  { %v3790_v18 = vrot.slane %v2388_v28, %v2290_v31  ;;  %v3791_v20 = vrot.slane %v2388_v28, %v2286_v29  ;;  %v1535_v50 = vadd.f32 %v1534_v48, %v1533_v10  ;;  %v1555_v63 = vsel %vm36_vm0, %v1403_v2, 0.0 }
 0x234   :  { %v1536_v1 = vsel %vm36_vm0, %v1393_v47, 0.0  ;;  %v3792_v40 = vrot.slane %v2392_v32, %v2230_v11  ;;  %v3793_v43 = vrot.slane %v2392_v32, %v2256_v19  ;;  %v1554_v62 = vadd.f32 %v1553_v52, %v1552_v13 }
 0x235   :  { %v1404_v4 = vmul.f32 %v3790_v18, %v2965_v17  ;;  %v1405_v12 = vmul.f32 %v3791_v20, %v2997_v61  ;;  %v1537_v5 = vadd.f32 %v1536_v1, %v1535_v50  ;;  %v1538_v18 = vsel %vm36_vm0, %v1394_v44, 0.0 }
 0x236   :  { %v1416_v8 = vmul.f32 %v3792_v40, %v2877_v51  ;;  %v1417_v3 = vmul.f32 %v3793_v43, %v2885_v6  ;;  %v3794_v10 = vrot.slane %v2392_v32, %v2277_v26  ;;  %v1513_v47 = vadd.f32 %v1512_v58, %v1511_v49 }
 0x237   :  { %v3795_v48 = vrot.slane %v2381_v24, %v2268_v23  ;;  %v3796_v40 = vrot.slane %v2381_v24, %v2290_v31  ;;  %v1557_v44 = vsel %vm36_vm0, %v1404_v4, 0.0  ;;  %v1559_v52 = vsel %vm36_vm0, %v1405_v12, 0.0 }
 0x238   :  { %v1418_v2 = vmul.f32 %v3794_v10, %v2919_v0  ;;  %v1579_v13 = vsel %vm36_vm0, %v1416_v8, 0.0  ;;  %v3797_v58 = vrot.slane %v2381_v24, %v2286_v29  ;;  %v1539_v1 = vadd.f32 %v1538_v18, %v1537_v5 }
 0x239   :  { %v1395_v20 = vmul.f32 %v3795_v48, %v2944_v56  ;;  %v1396_v43 = vmul.f32 %v3796_v40, %v2965_v17  ;;  %v1580_v50 = vadd.f32 %v1579_v13, %v1578_v54  ;;  %v1581_v10 = vsel %vm36_vm0, %v1417_v3, 0.0 }
 0x23a   :  { %v1397_v49 = vmul.f32 %v3797_v58, %v2997_v61  ;;  %v1583_v48 = vsel %vm36_vm0, %v1418_v2, 0.0  ;;  %v3798_v40 = vrot.slane %v2390_v30, %v2244_v15  ;;  %v1556_v22 = vadd.f32 %v1555_v63, %v1554_v62 }
 0x23b   :  { %v3799_v4 = vrot.slane %v2392_v32, %v2268_v23  ;;  %v1582_v42 = vadd.f32 %v1581_v10, %v1580_v50  ;;  %v3800_v54 = vrot.slane %v2390_v30, %v2230_v11  ;;  %v3142_v3 = vadd.f32 %v1514_v14, %v1513_v47 }
 0x23c   :  { %v1407_v8 = vmul.f32 %v3798_v40, %v2842_v53  ;;  %v1540_v18 = vsel %vm36_vm0, %v1395_v20, 0.0  ;;  %v1542_v2 = vsel %vm36_vm0, %v1396_v43, 0.0  ;;  %v3801_v63 = vrot.slane %v2390_v30, %v2256_v19 }
 0x23d   :  { %v1419_v12 = vmul.f32 %v3799_v4, %v2944_v56  ;;  %v1408_v5 = vmul.f32 %v3800_v54, %v2877_v51  ;;  %v1544_v13 = vsel %vm36_vm0, %v1397_v49, 0.0  ;;  %v3802_v58 = vrot.slane %v2392_v32, %v2290_v31 }
 0x23e   :  { %v1409_v62 = vmul.f32 %v3801_v63, %v2885_v6  ;;  %v1584_v10 = vadd.f32 %v1583_v48, %v1582_v42  ;;  %v3803_v14 = vrot.slane %v2390_v30, %v2277_v26  ;;  %v1541_v20 = vadd.f32 %v1540_v18, %v1539_v1 }
 0x23f   :  { %v1420_v50 = vmul.f32 %v3802_v58, %v2965_v17  ;;  %v3804_v43 = vrot.slane %v2392_v32, %v2286_v29  ;;  %v1563_v4 = vsel %vm36_vm0, %v1407_v8, 0.0  ;;  %v1564_v49 = vsel %vm36_vm0, %v1408_v5, 0.0 }
 0x240   :  { %v1410_v47 = vmul.f32 %v3803_v14, %v2919_v0  ;;  %v1558_v54 = vadd.f32 %v1557_v44, %v1556_v22  ;;  %v1585_v63 = vsel %vm36_vm0, %v1419_v12, 0.0  ;;  %v1565_v58 = vadd.f32 %v1564_v49, %v1563_v4 }
 0x241   :  { %v1421_v40 = vmul.f32 %v3804_v43, %v2997_v61  ;;  %v1566_v42 = vsel %vm36_vm0, %v1409_v62, 0.0  ;;  %v1586_v48 = vadd.f32 %v1585_v63, %v1584_v10  ;;  %v3805_v1 = vrot.slane %v2396_v34, %v2244_v15 }
 0x242   :  { %v3806_v14 = vrot.slane %v2396_v34, %v2230_v11  ;;  %v3807_v22 = vrot.slane %v2396_v34, %v2256_v19  ;;  %v1587_v8 = vsel %vm36_vm0, %v1420_v50, 0.0  ;;  %v3808_v12 = vrot.slane %v2390_v30, %v2268_v23 }
 0x243   :  { %v1431_v18 = vmul.f32 %v3805_v1, %v2842_v53  ;;  %v1567_v62 = vadd.f32 %v1566_v42, %v1565_v58  ;;  %v1568_v10 = vsel %vm36_vm0, %v1410_v47, 0.0  ;;  %v1543_v4 = vadd.f32 %v1542_v2, %v1541_v20 }
 0x244   :  { %v1432_v43 = vmul.f32 %v3806_v14, %v2877_v51  ;;  %v1433_v44 = vmul.f32 %v3807_v22, %v2885_v6  ;;  %v1411_v5 = vmul.f32 %v3808_v12, %v2944_v56  ;;  %v3809_v49 = vrot.slane %v2396_v34, %v2277_v26 }
 0x245   :  { %v1608_v1 = vsel %vm36_vm0, %v1431_v18, 0.0  ;;  %v1589_v50 = vsel %vm36_vm0, %v1421_v40, 0.0  ;;  %v3810_v22 = vrot.slane %v2390_v30, %v2290_v31  ;;  %v3811_v2 = vrot.slane %v2390_v30, %v2286_v29 }
 0x246   :  { %v1434_v63 = vmul.f32 %v3809_v49, %v2919_v0  ;;  %v1609_v14 = vsel %vm36_vm0, %v1432_v43, 0.0  ;;  %v3200_v58 = vadd.f32 %v1559_v52, %v1558_v54  ;;  %v1588_v42 = vadd.f32 %v1587_v8, %v1586_v48 }
 0x247   :  { %v1412_v12 = vmul.f32 %v3810_v22, %v2965_v17  ;;  %v1413_v47 = vmul.f32 %v3811_v2, %v2997_v61  ;;  %v1610_v20 = vadd.f32 %v1609_v14, %v1608_v1  ;;  %v1569_v49 = vadd.f32 %v1568_v10, %v1567_v62 }
 0x248   :  { %v1611_v18 = vsel %vm36_vm0, %v1433_v44, 0.0  ;;  %v3812_v40 = vrot.slane %v2396_v34, %v2268_v23  ;;  %v3813_v22 = vrot.slane %v2394_v33, %v2244_v15  ;;  %v3814_v52 = vrot.slane %v2394_v33, %v2230_v11 }
 0x249   :  { %v1612_v59 = vadd.f32 %v1611_v18, %v1610_v20  ;;  %v3215_v48 = vadd.f32 %v1544_v13, %v1543_v4  ;;  %v1570_v44 = vsel %vm36_vm0, %v1411_v5, 0.0  ;;  %v1613_v8 = vsel %vm36_vm0, %v1434_v63, 0.0 }
 0x24a   :  { %v1435_v43 = vmul.f32 %v3812_v40, %v2944_v56  ;;  %v1423_v45 = vmul.f32 %v3813_v22, %v2842_v53  ;;  %v1424_v54 = vmul.f32 %v3814_v52, %v2877_v51  ;;  %v3815_v62 = vrot.slane %v2394_v33, %v2256_v19 }
 0x24b   :  { %v1572_v1 = vsel %vm36_vm0, %v1412_v12, 0.0  ;;  %v1574_v14 = vsel %vm36_vm0, %v1413_v47, 0.0  ;;  %v3816_v2 = vrot.slane %v2396_v34, %v2290_v31  ;;  %v3817_v13 = vrot.slane %v2394_v33, %v2277_v26 }
 0x24c   :  { %v1425_v10 = vmul.f32 %v3815_v62, %v2885_v6  ;;  %v1571_v4 = vadd.f32 %v1570_v44, %v1569_v49  ;;  %v3818_v63 = vrot.slane %v2396_v34, %v2286_v29  ;;  %v1593_v12 = vsel %vm36_vm0, %v1423_v45, 0.0 }
 0x24d   :  { %v1436_v20 = vmul.f32 %v3816_v2, %v2965_v17  ;;  %v1426_v5 = vmul.f32 %v3817_v13, %v2919_v0  ;;  %v1594_v47 = vsel %vm36_vm0, %v1424_v54, 0.0  ;;  %v3239_v40 = vadd.f32 %v1589_v50, %v1588_v42 }
 0x24e   :  { %v1437_v18 = vmul.f32 %v3818_v63, %v2997_v61  ;;  %v1614_v22 = vadd.f32 %v1613_v8, %v1612_v59  ;;  %v1615_v52 = vsel %vm36_vm0, %v1435_v43, 0.0  ;;  %v1595_v62 = vadd.f32 %v1594_v47, %v1593_v12 }
 0x24f   :  { %v1596_v2 = vsel %vm36_vm0, %v1425_v10, 0.0  ;;  %v3819_v49 = vrot.slane %v2400_v37, %v2244_v15  ;;  %v3820_v13 = vrot.slane %v2400_v37, %v2230_v11  ;;  %v3821_v50 = vrot.slane %v2400_v37, %v2256_v19 }
 0x250   :  { %v1617_v42 = vsel %vm36_vm0, %v1436_v20, 0.0  ;;  %v1597_v43 = vadd.f32 %v1596_v2, %v1595_v62  ;;  %v1598_v54 = vsel %vm36_vm0, %v1426_v5, 0.0  ;;  %v3822_v8 = vrot.slane %v2400_v37, %v2277_v26 }
 0x251   :  { %v1447_v44 = vmul.f32 %v3819_v49, %v2842_v53  ;;  %v1448_v45 = vmul.f32 %v3820_v13, %v2877_v51  ;;  %v1449_v59 = vmul.f32 %v3821_v50, %v2885_v6  ;;  %v1573_v63 = vadd.f32 %v1572_v1, %v1571_v4 }
 0x252   :  { %v1450_v10 = vmul.f32 %v3822_v8, %v2919_v0  ;;  %v3823_v12 = vrot.slane %v2394_v33, %v2268_v23  ;;  %v1616_v50 = vadd.f32 %v1615_v52, %v1614_v22  ;;  %v1619_v20 = vsel %vm36_vm0, %v1437_v18, 0.0 }
 0x253   :  { %v1638_v49 = vsel %vm36_vm0, %v1447_v44, 0.0  ;;  %v1639_v13 = vsel %vm36_vm0, %v1448_v45, 0.0  ;;  %v3824_v5 = vrot.slane %v2394_v33, %v2290_v31  ;;  %v3825_v1 = vrot.slane %v2394_v33, %v2286_v29 }
 0x254   :  { %v1427_v47 = vmul.f32 %v3823_v12, %v2944_v56  ;;  %v1640_v2 = vadd.f32 %v1639_v13, %v1638_v49  ;;  %v1599_v8 = vadd.f32 %v1598_v54, %v1597_v43  ;;  %v1641_v12 = vsel %vm36_vm0, %v1449_v59, 0.0 }
 0x255   :  { %v1428_v62 = vmul.f32 %v3824_v5, %v2965_v17  ;;  %v1429_v4 = vmul.f32 %v3825_v1, %v2997_v61  ;;  %v1643_v44 = vsel %vm36_vm0, %v1450_v10, 0.0  ;;  %v3826_v18 = vrot.slane %v2400_v37, %v2268_v23 }
 0x256   :  { %v1642_v52 = vadd.f32 %v1641_v12, %v1640_v2  ;;  %v3827_v45 = vrot.slane %v2398_v36, %v2244_v15  ;;  %v3828_v13 = vrot.slane %v2398_v36, %v2230_v11  ;;  %v3290_v54 = vadd.f32 %v1574_v14, %v1573_v63  ;;  %v716_v12 = vpop.xlane.xlu1 %715 }
 0x257   :  { %v1451_v22 = vmul.f32 %v3826_v18, %v2944_v56  ;;  %v1600_v59 = vsel %vm36_vm0, %v1427_v47, 0.0  ;;  %v3829_v10 = vrot.slane %v2398_v36, %v2256_v19  ;;  %v3830_v2 = vrot.slane %v2398_v36, %v2277_v26 }
 0x258   :  { %v1439_v49 = vmul.f32 %v3827_v45, %v2842_v53  ;;  %v1440_v43 = vmul.f32 %v3828_v13, %v2877_v51  ;;  %v1618_v18 = vadd.f32 %v1617_v42, %v1616_v50  ;;  %v1602_v45 = vsel %vm36_vm0, %v1428_v62, 0.0 }
 0x259   :  { %v1441_v5 = vmul.f32 %v3829_v10, %v2885_v6  ;;  %v1442_v1 = vmul.f32 %v3830_v2, %v2919_v0  ;;  %v3831_v14 = vrot.slane %v2400_v37, %v2290_v31  ;;  %v1644_v47 = vadd.f32 %v1643_v44, %v1642_v52 }
 0x25a   :  { %2162 = vrcp.f32 %v716_v12  ;;  %v1601_v13 = vadd.f32 %v1600_v59, %v1599_v8  ;;  %v1623_v57 = vsel %vm36_vm0, %v1439_v49, 0.0  ;;  %v1624_v10 = vsel %vm36_vm0, %v1440_v43, 0.0  ;;  %v3327_v59 = vpop.permute.xlu1 %1896 }
 0x25b   :  { %v1452_v63 = vmul.f32 %v3831_v14, %v2965_v17  ;;  %v1645_v25 = vsel %vm36_vm0, %v1451_v22, 0.0  ;;  %v3832_v42 = vrot.slane %v2398_v36, %v2268_v23  ;;  %v3833_v62 = vrot.slane %v2398_v36, %v2290_v31  ;;  %3836 = vst [vmem:[#allocation19_spill] sm:$0xff] %v3327_v59  ;;  %1933 = vst.msk [vmem:[%s3729_s5 + $0xe0] sm:$0xff] %vm1903_vm2, %v3327_v59 }
 0x25c   :  { %v1625_v14 = vadd.f32 %v1624_v10, %v1623_v57  ;;  %v1626_v44 = vsel %vm36_vm0, %v1441_v5, 0.0  ;;  %v1628_v8 = vsel %vm36_vm0, %v1442_v1, 0.0  ;;  %v3834_v52 = vrot.slane %v2404_v39, %v2244_v15  ;;  %1934 = vst.msk [vmem:[%s3729_s5 + $0xe8] sm:$0x3] %vm1905_vm3, %v3327_v59 }
 0x25d   :  { %v1443_v50 = vmul.f32 %v3832_v42, %v2944_v56  ;;  %v1444_v2 = vmul.f32 %v3833_v62, %v2965_v17  ;;  %v3835_v49 = vrot.slane %v2404_v39, %v2230_v11  ;;  %v1604_v12 = vsel %vm36_vm0, %v1429_v4, 0.0 }
 0x25e   :  { %v1463_v22 = vmul.f32 %v3834_v52, %v2842_v53  ;;  %v1646_v42 = vadd.f32 %v1645_v25, %v1644_v47  ;;  %v1627_v57 = vadd.f32 %v1626_v44, %v1625_v14  ;;  %v3837_v5 = vrot.slane %v2404_v39, %v2256_v19 }
 0x25f   :  { %v1464_v43 = vmul.f32 %v3835_v49, %v2877_v51  ;;  %v3344_v4 = vadd.f32 %v1619_v20, %v1618_v18  ;;  %v1603_v25 = vadd.f32 %v1602_v45, %v1601_v13  ;;  %v3839_v47 = vrot.slane %v2400_v37, %v2286_v29 }
 0x260   :  { %v1465_v1 = vmul.f32 %v3837_v5, %v2885_v6  ;;  %v1647_v62 = vsel %vm36_vm0, %v1452_v63, 0.0  ;;  %v1629_v14 = vadd.f32 %v1628_v8, %v1627_v57  ;;  %v3840_v44 = vrot.slane %v2404_v39, %v2277_v26 }
 0x261   :  { %3838 = vst [vmem:[#allocation20_spill] sm:$0xff] %v3344_v4  ;;  %v1453_v10 = vmul.f32 %v3839_v47, %v2997_v61  ;;  %v1668_v49 = vsel %vm36_vm0, %v1463_v22, 0.0  ;;  %v1669_v5 = vsel %vm36_vm0, %v1464_v43, 0.0  ;;  %v3841_v20 = vrot.slane %v2398_v36, %v2286_v29 }
 0x262   :  { %v1466_v52 = vmul.f32 %v3840_v44, %v2919_v0  ;;  %v1630_v45 = vsel %vm36_vm0, %v1443_v50, 0.0  ;;  %v1632_v13 = vsel %vm36_vm0, %v1444_v2, 0.0  ;;  %v1670_v63 = vadd.f32 %v1669_v5, %v1668_v49 }
 0x263   :  { %v1445_v18 = vmul.f32 %v3841_v20, %v2997_v61  ;;  %v1648_v8 = vadd.f32 %v1647_v62, %v1646_v42  ;;  %v1631_v57 = vadd.f32 %v1630_v45, %v1629_v14  ;;  %v1671_v47 = vsel %vm36_vm0, %v1465_v1, 0.0 }
 0x264   :  { %v3842_v22 = vrot.slane %v2402_v38, %v2230_v11  ;;  %v3843_v43 = vrot.slane %v2404_v39, %v2268_v23  ;;  %v3844_v50 = vrot.slane %v2404_v39, %v2290_v31  ;;  %v3845_v42 = vrot.slane %v2404_v39, %v2286_v29 }
 0x265   :  { %v1672_v62 = vadd.f32 %v1671_v47, %v1670_v63  ;;  %v3380_v14 = vadd.f32 %v1604_v12, %v1603_v25  ;;  %v1649_v49 = vsel %vm36_vm0, %v1453_v10, 0.0  ;;  %v1673_v5 = vsel %vm36_vm0, %v1466_v52, 0.0 }
 0x266   :  { %v1456_v44 = vmul.f32 %v3842_v22, %v2877_v51  ;;  %v1467_v59 = vmul.f32 %v3843_v43, %v2944_v56  ;;  %v1468_v2 = vmul.f32 %v3844_v50, %v2965_v17  ;;  %v1469_v1 = vmul.f32 %v3845_v42, %v2997_v61  ;;  %v2163_v22 = vpop.eup %2162  ;;  %v740_v43 = vld [vmem:[%s3730_s2 + $0x38] sm:$0xff]  ;;  %s2167_s2 = smov 1  }
 0x267   :  { %3846 = vst [vmem:[#allocation21_spill] sm:$0xff] %v3380_v14  ;;  %v3847_v20 = vrot.slane %v2402_v38, %v2244_v15  ;;  %v1633_v50 = vadd.f32 %v1632_v13, %v1631_v57  ;;  %v1634_v42 = vsel %vm36_vm0, %v1445_v18, 0.0  ;;  %v3848_v12 = vrot.slane %v2402_v38, %v2256_v19 }
 0x268   :  { %v3849_v10 = vrot.slane %v2402_v38, %v2277_v26  ;;  %v732_v63 = vmul.f32 %v2163_v22, %v2597_v60  ;;  %v3401_v47 = vadd.f32 %v1649_v49, %v1648_v8  ;;  %v3850_v13 = vrot.slane %v2402_v38, %v2268_v23 }
 0x269   :  { %v1455_v45 = vmul.f32 %v3847_v20, %v2842_v53  ;;  %v1457_v25 = vmul.f32 %v3848_v12, %v2885_v6  ;;  %v1654_v18 = vsel %vm36_vm0, %v1456_v44, 0.0  ;;  %v1674_v20 = vadd.f32 %v1673_v5, %v1672_v62 }
 0x26a   :  { %v1458_v52 = vmul.f32 %v3849_v10, %v2919_v0  ;;  %v1459_v57 = vmul.f32 %v3850_v13, %v2944_v56  ;;  %v1675_v14 = vsel %vm36_vm0, %v1467_v59, 0.0  ;;  %v1677_v12 = vsel %vm36_vm0, %v1468_v2, 0.0 }
 0x26b   :  { %v3411_v4 = vsel %vm36_vm0, %v1469_v1, 0.0  ;;  %v3413_v10 = vmul.f32 %v740_v43, %v732_v63  ;;  %v3851_v60 = vrot.slane %v2402_v38, %v2290_v31  ;;  %v3852_v49 = vrot.slane %v2402_v38, %v2286_v29 }
 0x26c   :  { %v1653_v62 = vsel %vm36_vm0, %v1455_v45, 0.0  ;;  %v1635_v59 = vadd.f32 %v1634_v42, %v1633_v50  ;;  %v1656_v2 = vsel %vm36_vm0, %v1457_v25, 0.0  ;;  %v1658_v1 = vsel %vm36_vm0, %v1458_v52, 0.0 }
 0x26d   :  { %v1460_v8 = vmul.f32 %v3851_v60, %v2965_v17  ;;  %v1461_v44 = vmul.f32 %v3852_v49, %v2997_v61  ;;  %v1655_v5 = vadd.f32 %v1654_v18, %v1653_v62  ;;  %v3853_v22 = vrot.slane %v2376_v21, %v2297_v35 }
 0x26e   :  { %v3854_v63 = vrot.slane %v2386_v27, %v2297_v35  ;;  %v3855_v45 = vrot.slane %v2388_v28, %v2297_v35  ;;  %v1660_v42 = vsel %vm36_vm0, %v1459_v57, 0.0  ;;  %v3856_v25 = vrot.slane %v2381_v24, %v2297_v35 }
 0x26f   :  { %v1390_v43 = vmul.f32 %v3853_v22, %v3413_v10  ;;  %v3857_v21 = vrot.slane %v2392_v32, %v2297_v35  ;;  %v3858_v27 = vrot.slane %v2390_v30, %v2297_v35  ;;  %v1676_v49 = vadd.f32 %v1675_v14, %v1674_v20 }
 0x270   :  { %v1382_v13 = vmul.f32 %v3854_v63, %v3413_v10  ;;  %v1406_v50 = vmul.f32 %v3855_v45, %v3413_v10  ;;  %v1398_v52 = vmul.f32 %v3856_v25, %v3413_v10  ;;  %v1662_v24 = vsel %vm36_vm0, %v1460_v8, 0.0 }
 0x271   :  { %v1422_v18 = vmul.f32 %v3857_v21, %v3413_v10  ;;  %v1414_v60 = vmul.f32 %v3858_v27, %v3413_v10  ;;  %v1531_v28 = vsel %vm36_vm0, %v1390_v43, 0.0  ;;  %v3859_v32 = vrot.slane %v2396_v34, %v2297_v35 }
 0x272   :  { %v1516_v57 = vsel %vm36_vm0, %v1382_v13, 0.0  ;;  %v1561_v62 = vsel %vm36_vm0, %v1406_v50, 0.0  ;;  %v1532_v22 = vadd.f32 %v1531_v28, %v3088_v46  ;;  %v3462_v30 = vsel %vm36_vm0, %v1461_v44, 0.0 }
 0x273   :  { %v1517_v63 = vadd.f32 %v1516_v57, %v3142_v3  ;;  %v1438_v45 = vmul.f32 %v3859_v32, %v3413_v10  ;;  %v1562_v14 = vadd.f32 %v1561_v62, %v3200_v58  ;;  %v1546_v20 = vsel %vm36_vm0, %v1398_v52, 0.0 }
 0x274   :  { %v1657_v43 = vadd.f32 %v1656_v2, %v1655_v5  ;;  %v3860_v8 = vrot.slane %v2408_v41, %v2244_v15  ;;  %v1938_v3 = vadd.f32 %v2423_v55, %v1532_v22  ;;  %v1591_v34 = vsel %vm36_vm0, %v1422_v18, 0.0 }
 0x275   :  { %v1937_v13 = vadd.f32 %v2445_v9, %v1517_v63  ;;  %v1576_v50 = vsel %vm36_vm0, %v1414_v60, 0.0  ;;  %v1547_v44 = vadd.f32 %v1546_v20, %v3215_v48  ;;  %v1678_v25 = vadd.f32 %v1677_v12, %v1676_v49  ;;  %v3868_v63 = vld [vmem:[#allocation20_spill] sm:$0xff] }
 0x276   :  { %v1479_v46 = vmul.f32 %v3860_v8, %v2842_v53  ;;  %v3861_v58 = vrot.slane %v2408_v41, %v2230_v11  ;;  %v3862_v2 = vrot.slane %v2408_v41, %v2256_v19  ;;  %1971 = vrot.lane.b32.xlu0 %v1938_v3, %s2167_s2  ;;  %v1621_v55 = vsel %vm36_vm0, %v1438_v45, 0.0 }
 0x277   :  { %1969 = vrot.lane.b32.xlu1 %v1937_v13, %s2167_s2  ;;  %v3863_v9 = vrot.slane %v2394_v33, %v2297_v35  ;;  %v3864_v12 = vrot.slane %v2400_v37, %v2297_v35  ;;  %v3865_v18 = vrot.slane %v2398_v36, %v2297_v35  ;;  %v1940_v60 = vadd.f32 %v2475_v16, %v1562_v14 }
 0x278   :  { %v1480_v5 = vmul.f32 %v3861_v58, %v2877_v51  ;;  %v1481_v52 = vmul.f32 %v3862_v2, %v2885_v6  ;;  %v1592_v49 = vadd.f32 %v1591_v34, %v3239_v40  ;;  %v1577_v28 = vadd.f32 %v1576_v50, %v3290_v54  ;;  %v3872_v34 = vld [vmem:[#allocation5_spill] sm:$0xff] }
 0x279   :  { %v1430_v48 = vmul.f32 %v3863_v9, %v3413_v10  ;;  %v1454_v21 = vmul.f32 %v3864_v12, %v3413_v10  ;;  %v1446_v27 = vmul.f32 %v3865_v18, %v3413_v10  ;;  %v3866_v33 = vrot.slane %v2408_v41, %v2277_v26 }
 0x27a   :  { %v1939_v62 = vadd.f32 %v2441_v7, %v1547_v44  ;;  %v3867_v36 = vrot.slane %v2404_v39, %v2297_v35  ;;  %v1622_v40 = vadd.f32 %v1621_v55, %v3868_v63  ;;  %v3869_v32 = vrot.slane %v2408_v41, %v2268_v23  ;;  %1975 = vrot.lane.b32.xlu0 %v1940_v60, %s2167_s2  ;;  %v3871_v39 = vld [vmem:[#allocation21_spill] sm:$0xff]  ;;  %v3873_v44 = vld [vmem:[#allocation10_spill] sm:$0xff] }
 0x27b   :  { %v1482_v57 = vmul.f32 %v3866_v33, %v2919_v0  ;;  %v1606_v37 = vsel %vm36_vm0, %v1430_v48, 0.0  ;;  %v1651_v22 = vsel %vm36_vm0, %v1454_v21, 0.0  ;;  %v1636_v54 = vsel %vm36_vm0, %v1446_v27, 0.0  ;;  %v3879_v33 = vld [vmem:[#allocation2_spill] sm:$0xff] }
 0x27c   :  { %v1470_v16 = vmul.f32 %v3867_v36, %v3413_v10  ;;  %v1483_v45 = vmul.f32 %v3869_v32, %v2944_v56  ;;  %v3870_v7 = vrot.slane %v2408_v41, %v2290_v31  ;;  %1973 = vrot.lane.b32.xlu1 %v1939_v62, %s2167_s2  ;;  %v1607_v20 = vadd.f32 %v1606_v37, %v3871_v39  ;;  %v3885_v32 = vld [vmem:[#allocation8_spill] sm:$0xff] }
 0x27d   :  { %v1659_v3 = vadd.f32 %v1658_v1, %v1657_v43  ;;  %v1698_v13 = vsel %vm36_vm0, %v1479_v46, 0.0  ;;  %v1942_v50 = vadd.f32 %v3872_v34, %v1592_v49  ;;  %v1941_v58 = vadd.f32 %v3873_v44, %v1577_v28  ;;  %v3875_v1 = vld [vmem:[#allocation6_spill] sm:$0xff] }
 0x27e   :  { %v1484_v14 = vmul.f32 %v3870_v7, %v2965_v17  ;;  %v1681_v8 = vsel %vm36_vm0, %v1470_v16, 0.0  ;;  %v1652_v2 = vadd.f32 %v1651_v22, %v3401_v47  ;;  %v1680_v55 = vadd.f32 %v3411_v4, %v1678_v25  ;;  %v3877_v4 = vld [vmem:[#allocation11_spill] sm:$0xff]  ;;  %v3882_v16 = vld [vmem:[#allocation12_spill] sm:$0xff] }
 0x27f   :  { %v1637_v9 = vadd.f32 %v1636_v54, %v1635_v59  ;;  %v3874_v48 = vrot.slane %v2402_v38, %v2297_v35  ;;  %v1661_v21 = vadd.f32 %v1660_v42, %v1659_v3  ;;  %v1699_v18 = vsel %vm36_vm0, %v1480_v5, 0.0  ;;  %1979 = vrot.lane.b32.xlu0 %v1942_v50, %s2167_s2  ;;  %v3878_v5 = vld [vmem:[#allocation7_spill] sm:$0xff] }
 0x280   :  { %v1944_v43 = vadd.f32 %v3875_v1, %v1622_v40  ;;  %v1682_v46 = vadd.f32 %v1681_v8, %v1680_v55  ;;  %v3876_v27 = vrot.slane %v2408_v41, %v2286_v29  ;;  %v1700_v47 = vadd.f32 %v1699_v18, %v1698_v13  ;;  %1977 = vrot.lane.b32.xlu1 %v1941_v58, %s2167_s2  ;;  %v3889_v1 = vld [vmem:[#allocation4_spill] sm:$0xff] }
 0x281   :  { %v1462_v12 = vmul.f32 %v3874_v48, %v3413_v10  ;;  %v1943_v59 = vadd.f32 %v3877_v4, %v1607_v20  ;;  %v1663_v38 = vadd.f32 %v1662_v24, %v1661_v21  ;;  %v1701_v42 = vsel %vm36_vm0, %v1481_v52, 0.0 }
 0x282   :  { %v1485_v60 = vmul.f32 %v3876_v27, %v2997_v61  ;;  %v1703_v25 = vsel %vm36_vm0, %v1482_v57, 0.0  ;;  %v1946_v49 = vadd.f32 %v3878_v5, %v1652_v2  ;;  %v1702_v28 = vadd.f32 %v1701_v42, %v1700_v47 }
 0x283   :  { %v3880_v62 = vrot.slane %v3879_v33, %v2244_v15  ;;  %v3881_v22 = vrot.slane %v3879_v33, %v2230_v11  ;;  %v1945_v63 = vadd.f32 %v3882_v16, %v1637_v9  ;;  %v1666_v24 = vsel %vm36_vm0, %v1462_v12, 0.0  ;;  %1983 = vrot.lane.b32.xlu0 %v1944_v43, %s2167_s2 }
 0x284   :  { %v3883_v52 = vrot.slane %v3879_v33, %v2256_v19  ;;  %v3884_v40 = vrot.slane %v3879_v33, %v2277_v26  ;;  %v1948_v7 = vadd.f32 %v3885_v32, %v1682_v46  ;;  %v3886_v39 = vrot.slane %v2408_v41, %v2297_v35  ;;  %1981 = vrot.lane.b32.xlu1 %v1943_v59, %s2167_s2  ;;  %v3901_v32 = vld [vmem:[#allocation18_spill] sm:$0xff] }
 0x285   :  { %v1471_v37 = vmul.f32 %v3880_v62, %v2842_v53  ;;  %v1472_v36 = vmul.f32 %v3881_v22, %v2877_v51  ;;  %v1704_v8 = vadd.f32 %v1703_v25, %v1702_v28  ;;  %v1705_v3 = vsel %vm36_vm0, %v1483_v45, 0.0  ;;  %v3896_v28 = vld [vmem:[#allocation13_spill] sm:$0xff] }
 0x286   :  { %v1473_v57 = vmul.f32 %v3883_v52, %v2885_v6  ;;  %v1474_v54 = vmul.f32 %v3884_v40, %v2919_v0  ;;  %v1486_v20 = vmul.f32 %v3886_v39, %v3413_v10  ;;  %v1665_v13 = vadd.f32 %v3462_v30, %v1663_v38  ;;  %v3902_v39 = vld [vmem:[#allocation17_spill] sm:$0xff] }
 0x287   :  { %v1707_v34 = vsel %vm36_vm0, %v1484_v14, 0.0  ;;  %v1683_v50 = vsel %vm36_vm0, %v1471_v37, 0.0  ;;  %v1684_v44 = vsel %vm36_vm0, %v1472_v36, 0.0  ;;  %v1706_v58 = vadd.f32 %v1705_v3, %v1704_v8  ;;  %1987 = vrot.lane.b32.xlu0 %v1946_v49, %s2167_s2 }
 0x288   :  { %v1709_v2 = vsel %vm36_vm0, %v1485_v60, 0.0  ;;  %v3887_v41 = vrot.slane %v3879_v33, %v2268_v23  ;;  %v1685_v55 = vadd.f32 %v1684_v44, %v1683_v50  ;;  %v1667_v9 = vadd.f32 %v1666_v24, %v1665_v13  ;;  %1985 = vrot.lane.b32.xlu1 %v1945_v63, %s2167_s2  ;;  %v3903_v13 = vld [vmem:[#allocation9_spill] sm:$0xff]  ;;  %v3904_v50 = vld [vmem:[#allocation16_spill] sm:$0xff] }
 0x289   :  { %v3888_v30 = vrot.slane %v3879_v33, %v2290_v31  ;;  %v1686_v14 = vsel %vm36_vm0, %v1473_v57, 0.0  ;;  %v1688_v12 = vsel %vm36_vm0, %v1474_v54, 0.0  ;;  %v1708_v21 = vadd.f32 %v1707_v34, %v1706_v58 }
 0x28a   :  { %v1475_v45 = vmul.f32 %v3887_v41, %v2944_v56  ;;  %v1687_v18 = vadd.f32 %v1686_v14, %v1685_v55  ;;  %v3890_v43 = vrot.slane %v3889_v1, %v2244_v15  ;;  %v3891_v27 = vrot.slane %v3889_v1, %v2230_v11  ;;  %v3905_v14 = vld [vmem:[#allocation14_spill] sm:$0xff] }
 0x28b   :  { %v1476_v48 = vmul.f32 %v3888_v30, %v2965_v17  ;;  %v1711_v47 = vsel %vm36_vm0, %v1486_v20, 0.0  ;;  %v3892_v4 = vrot.slane %v3879_v33, %v2286_v29  ;;  %v3893_v15 = vrot.slane %v3889_v1, %v2256_v19  ;;  %1991 = vrot.lane.b32.xlu0 %v1948_v7, %s2167_s2 }
 0x28c   :  { %v1495_v46 = vmul.f32 %v3890_v43, %v2842_v53  ;;  %v1496_v60 = vmul.f32 %v3891_v27, %v2877_v51  ;;  %v3894_v11 = vrot.slane %v3889_v1, %v2277_v26  ;;  %v1710_v38 = vadd.f32 %v1709_v2, %v1708_v21  ;;  %v3897_v26 = vld [vmem:[#allocation3_spill] sm:$0xff] }
 0x28d   :  { %v1477_v59 = vmul.f32 %v3892_v4, %v2997_v61  ;;  %v1497_v53 = vmul.f32 %v3893_v15, %v2885_v6  ;;  %v3895_v42 = vrot.slane %v3879_v33, %v2297_v35  ;;  %v1689_v5 = vadd.f32 %v1688_v12, %v1687_v18  ;;  %v3906_v43 = vld [vmem:[#allocation19_spill] sm:$0xff] }
 0x28e   :  { %v1498_v51 = vmul.f32 %v3894_v11, %v2919_v0  ;;  %v1690_v49 = vsel %vm36_vm0, %v1475_v45, 0.0  ;;  %v1947_v62 = vadd.f32 %v3896_v28, %v1667_v9  ;;  %v1692_v37 = vsel %vm36_vm0, %v1476_v48, 0.0  ;;  %v3907_v27 = vld [vmem:[#allocation15_spill] sm:$0xff] }
 0x28f   :  { %v1478_v25 = vmul.f32 %v3895_v42, %v3413_v10  ;;  %v1728_v19 = vsel %vm36_vm0, %v1495_v46, 0.0  ;;  %v1729_v6 = vsel %vm36_vm0, %v1496_v60, 0.0  ;;  %v3898_v0 = vrot.slane %v3897_v26, %v2297_v35 }
 0x290   :  { %v1712_v36 = vadd.f32 %v1711_v47, %v1710_v38  ;;  %v1691_v16 = vadd.f32 %v1690_v49, %v1689_v5  ;;  %v1730_v33 = vadd.f32 %v1729_v6, %v1728_v19  ;;  %1989 = vrot.lane.b32.xlu1 %v1947_v62, %s2167_s2  ;;  %v3899_v63 = vrot.slane %v3889_v1, %v2268_v23 }
 0x291   :  { %v1494_v22 = vmul.f32 %v3898_v0, %v3413_v10  ;;  %v3900_v52 = vrot.slane %v3889_v1, %v2290_v31  ;;  %v1731_v40 = vsel %vm36_vm0, %v1497_v53, 0.0  ;;  %v1733_v54 = vsel %vm36_vm0, %v1498_v51, 0.0 }
 0x292   :  { %v1499_v24 = vmul.f32 %v3899_v63, %v2944_v56  ;;  %v1723_v20 = vadd.f32 %v3902_v39, %v3901_v32  ;;  %v1693_v7 = vadd.f32 %v1692_v37, %v1691_v16  ;;  %v1370_v8 = vrot.slane %v3889_v1, %v2286_v29 }
 0x293   :  { %v1500_v57 = vmul.f32 %v3900_v52, %v2965_v17  ;;  %v1732_v3 = vadd.f32 %v1731_v40, %v1730_v33  ;;  %v1950_v23 = vadd.f32 %v3903_v13, %v1712_v36  ;;  %v1694_v56 = vsel %vm36_vm0, %v1477_v59, 0.0 }
 0x294   :  { %v1696_v34 = vsel %vm36_vm0, %v1478_v25, 0.0  ;;  %v1374_v31 = vrot.slane %v3889_v1, %v2297_v35  ;;  %v1726_v17 = vsel %vm36_vm0, %v1494_v22, 0.0  ;;  %v1724_v44 = vsel %vm36_vm0, %v3904_v50, 0.0 }
 0x295   :  { %v1695_v58 = vadd.f32 %v1694_v56, %v1693_v7  ;;  %v1734_v2 = vadd.f32 %v1733_v54, %v1732_v3  ;;  %1995 = vrot.lane.b32.xlu0 %v1950_v23, %s2167_s2  ;;  %v1501_v29 = vmul.f32 %v1370_v8, %v2997_v61  ;;  %v1735_v45 = vsel %vm36_vm0, %v1499_v24, 0.0 }
 0x296   :  { %v1502_v41 = vmul.f32 %v1374_v31, %v3413_v10  ;;  %v1737_v55 = vsel %vm36_vm0, %v1500_v57, 0.0  ;;  %v1725_v9 = vadd.f32 %v1724_v44, %v1723_v20 }
 0x297   :  { %v1697_v30 = vadd.f32 %v1696_v34, %v1695_v58  ;;  %v1736_v35 = vadd.f32 %v1735_v45, %v1734_v2  ;;  %v1739_v18 = vsel %vm36_vm0, %v1501_v29, 0.0 }
 0x298   :  { %v1727_v48 = vadd.f32 %v1726_v17, %v1725_v9  ;;  %v1741_v1 = vsel %vm36_vm0, %v1502_v41, 0.0 }
 0x299   :  { %v1949_v12 = vadd.f32 %v3905_v14, %v1697_v30  ;;  %v1738_v21 = vadd.f32 %v1737_v55, %v1736_v35 }
 0x29a   :  { %v1951_v10 = vadd.f32 %v3906_v43, %v1727_v48 }
 0x29b   :  { %1993 = vrot.lane.b32.xlu1 %v1949_v12, %s2167_s2  ;;  %v1740_v61 = vadd.f32 %v1739_v18, %v1738_v21 }
 0x29d   :  { %v1742_v46 = vadd.f32 %v1741_v1, %v1740_v61 }
 0x29f   :  { %1997 = vrot.lane.b32.xlu1 %v1951_v10, %s2167_s2  ;;  %v1952_v60 = vadd.f32 %v3907_v27, %v1742_v46 }
 0x2a1   :  { %1999 = vrot.lane.b32.xlu0 %v1952_v60, %s2167_s2 }
 0x2e8   :  { %v1972_v4 = vpop.permute.xlu0 %1971 }
 0x2e9   :  { %v1970_v47 = vpop.permute.xlu1 %1969  ;;  %2019 = vst.msk [vmem:[%s3729_s5 + $0x11] sm:$0xff] %vm2017_vm4, %v1972_v4 }
 0x2ea   :  { %2018 = vst.msk [vmem:[%s3729_s5 + $0x1] sm:$0xff] %vm2017_vm4, %v1970_v47 }
 0x2ec   :  { %v1976_v15 = vpop.permute.xlu0 %1975 }
 0x2ed   :  { %2021 = vst.msk [vmem:[%s3729_s5 + $0x31] sm:$0xff] %vm2017_vm4, %v1976_v15 }
 0x2ee   :  { %v1974_v59 = vpop.permute.xlu1 %1973 }
 0x2ef   :  { %2020 = vst.msk [vmem:[%s3729_s5 + $0x21] sm:$0xff] %vm2017_vm4, %v1974_v59 }
 0x2f1   :  { %v1980_v11 = vpop.permute.xlu0 %1979 }
 0x2f2   :  { %v1978_v53 = vpop.permute.xlu1 %1977  ;;  %2023 = vst.msk [vmem:[%s3729_s5 + $0x51] sm:$0xff] %vm2017_vm4, %v1980_v11 }
 0x2f3   :  { %2022 = vst.msk [vmem:[%s3729_s5 + $0x41] sm:$0xff] %vm2017_vm4, %v1978_v53 }
 0x2f5   :  { %v1984_v38 = vpop.permute.xlu0 %1983 }
 0x2f6   :  { %v1982_v51 = vpop.permute.xlu1 %1981  ;;  %2025 = vst.msk [vmem:[%s3729_s5 + $0x71] sm:$0xff] %vm2017_vm4, %v1984_v38 }
 0x2f7   :  { %2024 = vst.msk [vmem:[%s3729_s5 + $0x61] sm:$0xff] %vm2017_vm4, %v1982_v51 }
 0x2f9   :  { %v1988_v25 = vpop.permute.xlu0 %1987 }
 0x2fa   :  { %v1986_v42 = vpop.permute.xlu1 %1985  ;;  %2027 = vst.msk [vmem:[%s3729_s5 + $0x91] sm:$0xff] %vm2017_vm4, %v1988_v25 }
 0x2fb   :  { %2026 = vst.msk [vmem:[%s3729_s5 + $0x81] sm:$0xff] %vm2017_vm4, %v1986_v42 }
 0x2fd   :  { %v1992_v49 = vpop.permute.xlu0 %1991 }
 0x2fe   :  { %2029 = vst.msk [vmem:[%s3729_s5 + $0xb1] sm:$0xff] %vm2017_vm4, %v1992_v49 }
 0x302   :  { %v1990_v5 = vpop.permute.xlu1 %1989 }
 0x303   :  { %2028 = vst.msk [vmem:[%s3729_s5 + $0xa1] sm:$0xff] %vm2017_vm4, %v1990_v5 }
 0x307   :  { %v1996_v28 = vpop.permute.xlu0 %1995 }
 0x308   :  { %2031 = vst.msk [vmem:[%s3729_s5 + $0xd1] sm:$0xff] %vm2017_vm4, %v1996_v28 }
 0x30d   :  { %v1994_v62 = vpop.permute.xlu1 %1993 }
 0x30e   :  { %2030 = vst.msk [vmem:[%s3729_s5 + $0xc1] sm:$0xff] %vm2017_vm4, %v1994_v62 }
 0x311   :  { %v1998_v37 = vpop.permute.xlu1 %1997 }
 0x312   :  { %2032 = vst.msk [vmem:[%s3729_s5 + $0xe1] sm:$0xff] %vm2017_vm4, %v1998_v37 }
 0x313   :  { %v2000_v19 = vpop.permute.xlu0 %1999 }
 0x314   :  { %2033 = vst.msk [vmem:[%s3729_s5 + $0xf1] sm:$0xff] %vm2017_vm4, %v2000_v19 }

</bundles_post_ra>
